<compile_context>
chip_gen: v6e
topology: v6e:2x2x1
jax: 0.10.0
libtpu: 0.0.40
codegen_flags: <defaults>
</compile_context>

<pallas_src>
import math
from functools import partial

import jax
import jax.numpy as jnp
from jax.experimental import pallas as pl
from jax.experimental.pallas import tpu as pltpu


# ----------------------------- Pallas kernel ------------------------------ #
def attention_rpe_kernel(srcr_ref, tgt_ref, rpe_ref, w_ref, b_ref, out_ref,
                         *, tm, t, d, d_rpe):
    # per-step shapes: srcr/tgt [tm*t, d], rpe [tm*t, d_rpe], out [tm, d]
    srcr = srcr_ref[...]                 # [M, D]  query rows replicated T times
    tgtv = tgt_ref[...]                  # [M, D]
    rpev = rpe_ref[...]                  # [M, d_rpe]

    # static, sublane-aligned views into the packed weight slab (D, d_rpe are
    # multiples of 8 here, so every slice is tile-aligned)
    wq     = w_ref[0 * d:1 * d, :]       # [D, D]
    wk_tgt = w_ref[1 * d:2 * d, :]       # [D, D]
    wv_tgt = w_ref[2 * d:3 * d, :]       # [D, D]
    wout   = w_ref[3 * d:4 * d, :]       # [D, D]
    e_bd   = w_ref[4 * d:5 * d, :]       # [D, D] scaled block-diagonal indicator
    wk_rpe = w_ref[5 * d:5 * d + d_rpe, :]            # [d_rpe, D]
    wv_rpe = w_ref[5 * d + d_rpe:5 * d + 2 * d_rpe, :]  # [d_rpe, D]

    bq   = b_ref[0:1, :]
    bk   = b_ref[1:2, :]
    bv   = b_ref[2:3, :]
    bout = b_ref[3:4, :]

    # --- input projections (MXU). q/k/v are data-independent so their MXU
    #     pushes interleave; k/v K-split-accumulate the tgt and rpe streams. ---
    q = jnp.dot(srcr, wq, preferred_element_type=jnp.float32) + bq          # [M, D]
    k = (jnp.dot(tgtv, wk_tgt, preferred_element_type=jnp.float32)
         + jnp.dot(rpev, wk_rpe, preferred_element_type=jnp.float32) + bk)  # [M, D]
    v = (jnp.dot(tgtv, wv_tgt, preferred_element_type=jnp.float32)
         + jnp.dot(rpev, wv_rpe, preferred_element_type=jnp.float32) + bv)  # [M, D]

    # --- per-head logits via scaled block-diagonal indicator: output is the
    #     per-head logit replicated across that head's d_head lanes. ---
    qk = q * k                                                               # aligned vmul
    logits = jnp.dot(qk, e_bd, preferred_element_type=jnp.float32)          # [M, D]
    lg = logits.reshape(tm, t, d)

    # --- softmax over the tgt axis (values identical within each head's
    #     d_head lanes, so this directly yields the broadcast weights) ---
    m = jnp.max(lg, axis=1, keepdims=True)
    p = jnp.exp(lg - m)
    denom = jnp.sum(p, axis=1, keepdims=True)
    attn = p * pl.reciprocal(denom, approx=True)                            # [tm, t, D]

    # --- weighted sum over tgt of (v + rpe_v), then output projection ---
    out_heads = jnp.sum(attn * v.reshape(tm, t, d), axis=1)                 # [tm, D]
    out = jnp.dot(out_heads, wout, preferred_element_type=jnp.float32) + bout
    out_ref[...] = out.astype(out_ref.dtype)


# ------------------------------- wrapper ----------------------------------- #
def _pick_block_rows(bs, t, target_stream_rows=512):
    """Largest multiple-of-8 divisor of bs keeping ~target_stream_rows rows of
    the [tm*t, D] target stream per step (sized with v7x's 64 MiB VMEM /
    32 MiB scoped default in mind); falls back to full extent."""
    max_tm = max(8, (target_stream_rows // max(t, 1)) // 8 * 8)
    tm = min(max_tm, (bs // 8) * 8)
    while tm >= 8:
        if bs % tm == 0:
            return tm
        tm -= 8
    return bs


def _pack_params(params, d_model, n_head):
    """Wrapper-side constant folding: split fused kv/rpe weights (so the
    kernel never lane-slices), build the scaled block-diagonal indicator, and
    stack everything into one weight slab + one bias slab."""
    wq_t, bq, wkv_t, bkv, wrpe_t, brpe, wout_t, bout = params
    D = d_model
    d_head = D // n_head

    wk_tgt, wv_tgt = wkv_t[:, :D], wkv_t[:, D:]          # [D, D] each
    wk_rpe, wv_rpe = wrpe_t[:, :D], wrpe_t[:, D:]        # [d_rpe, D] each
    bk = bkv[:, :D] + brpe[:, :D]                        # [1, D]
    bv = bkv[:, D:] + brpe[:, D:]                        # [1, D]

    head = jnp.arange(D) // d_head
    e_bd = (head[:, None] == head[None, :]).astype(jnp.float32) / math.sqrt(d_head)

    w_slab = jnp.concatenate(
        [wq_t, wk_tgt, wv_tgt, wout_t, e_bd, wk_rpe, wv_rpe], axis=0)  # [5D+2*d_rpe, D]
    b_slab = jnp.concatenate([bq, bk, bv, bout], axis=0)               # [4, D]
    return w_slab, b_slab


def attention_rpe(src, tgt, rpe, params, n_head, block_rows=None):
    B, S, D = src.shape
    T = tgt.shape[2]
    d_rpe = rpe.shape[3]
    BS = B * S
    N = BS * T

    w_slab, b_slab = _pack_params(params, D, n_head)

    # q at the [N, D] target-stream layout (review: replicate src wrapper-side
    # rather than broadcasting across sublanes inside the kernel)
    src_rep = jnp.broadcast_to(src[:, :, None, :], (B, S, T, D)).reshape(N, D)
    tgt2d = tgt.reshape(N, D)
    rpe2d = rpe.reshape(N, d_rpe)

    tm = _pick_block_rows(BS, T) if block_rows is None else block_rows
    assert BS % tm == 0, "block_rows must divide B*S"
    grid = (BS // tm,)

    kernel = partial(attention_rpe_kernel, tm=tm, t=T, d=D, d_rpe=d_rpe)
    out2d = pl.pallas_call(
        kernel,
        out_shape=jax.ShapeDtypeStruct((BS, D), src.dtype),
        grid=grid,
        in_specs=[
            pl.BlockSpec((tm * T, D), lambda i: (i, 0)),      # src (replicated)
            pl.BlockSpec((tm * T, D), lambda i: (i, 0)),      # tgt stream
            pl.BlockSpec((tm * T, d_rpe), lambda i: (i, 0)),  # rpe stream
            pl.BlockSpec(w_slab.shape, lambda i: (0, 0)),     # resident weights
            pl.BlockSpec(b_slab.shape, lambda i: (0, 0)),     # resident biases
        ],
        out_specs=pl.BlockSpec((tm, D), lambda i: (i, 0)),
        compiler_params=pltpu.CompilerParams(
            dimension_semantics=("parallel",)),
    )(src_rep, tgt2d, rpe2d, w_slab, b_slab)

    return out2d.reshape(B, S, D)


# -------------------------- pure-JAX reference ----------------------------- #
def attention_rpe_reference(src, tgt, rpe, params, n_head):
    wq_t, bq, wkv_t, bkv, wrpe_t, brpe, wout_t, bout = params
    B, S, D = src.shape
    T = tgt.shape[2]
    d_head = D // n_head

    q = src @ wq_t + bq                                       # [B,S,D]
    kv = tgt @ wkv_t + bkv                                    # [B,S,T,2D]
    rp = rpe @ wrpe_t + brpe                                  # [B,S,T,2D]
    k, v = kv[..., :D], kv[..., D:]
    rpe_k, rpe_v = rp[..., :D], rp[..., D:]

    qh = q.reshape(B, S, n_head, d_head)
    kh = (k + rpe_k).reshape(B, S, T, n_head, d_head)
    vh = (v + rpe_v).reshape(B, S, T, n_head, d_head)

    attn = jnp.einsum('bshd,bsthd->bsth', qh, kh,
                      precision='highest') / math.sqrt(d_head)
    attn = jax.nn.softmax(attn, axis=2)
    out = jnp.einsum('bsth,bsthd->bshd', attn, vh, precision='highest')
    out = out.reshape(B, S, D)
    return out @ wout_t + bout


# --------------------------- parameter init -------------------------------- #
def init_params(key, d_model, d_rpe, n_proj_rpe=2):
    k1, k2, k3, k4 = jax.random.split(key, 4)
    # in_proj_weight: xavier_uniform over [3*d_model, d_model]
    bnd_in = math.sqrt(6.0 / (3 * d_model + d_model))
    in_proj_w = jax.random.uniform(k1, (3 * d_model, d_model),
                                   jnp.float32, -bnd_in, bnd_in)
    in_proj_b = jnp.zeros((3 * d_model,), jnp.float32)
    # out_proj_weight: xavier_uniform over [d_model, d_model]
    bnd_out = math.sqrt(6.0 / (2 * d_model))
    out_proj_w = jax.random.uniform(k2, (d_model, d_model),
                                    jnp.float32, -bnd_out, bnd_out)
    out_proj_b = jnp.zeros((d_model,), jnp.float32)
    # mlp_rpe: nn.Linear(d_rpe, n_proj_rpe*d_model) default-style init
    bnd_rpe = 1.0 / math.sqrt(d_rpe)
    rpe_w = jax.random.uniform(k3, (n_proj_rpe * d_model, d_rpe),
                               jnp.float32, -bnd_rpe, bnd_rpe)
    rpe_b = jax.random.uniform(k4, (n_proj_rpe * d_model,),
                               jnp.float32, -bnd_rpe, bnd_rpe)

    # pre-transpose for (rows, in) @ (in, out) kernel matmuls; biases as [1, N]
    wq_t = in_proj_w[:d_model].T                      # [D, D]
    bq = in_proj_b[:d_model][None, :]                 # [1, D]
    wkv_t = in_proj_w[d_model:].T                     # [D, 2D]
    bkv = in_proj_b[d_model:][None, :]                # [1, 2D]
    wrpe_t = rpe_w.T                                  # [d_rpe, 2D]
    brpe = rpe_b[None, :]                             # [1, 2D]
    wout_t = out_proj_w.T                             # [D, D]
    bout = out_proj_b[None, :]                        # [1, D]
    return (wq_t, bq, wkv_t, bkv, wrpe_t, brpe, wout_t, bout)


# --------------------------------- main ------------------------------------ #
if __name__ == "__main__":
    B, S, T = 2, 8, 8
    d_model, n_head, d_rpe = 32, 4, 16

    key = jax.random.PRNGKey(0)
    kp, ks, kt, kr = jax.random.split(key, 4)

    params = init_params(kp, d_model, d_rpe)
    src = jax.random.normal(ks, (B, S, d_model), jnp.float32)
    tgt = jax.random.normal(kt, (B, S, T, d_model), jnp.float32)
    rpe = jax.random.normal(kr, (B, S, T, d_rpe), jnp.float32)

    # block_rows=8 -> grid=(2,): exercises the pipelined multi-step row grid
    # even at these toy shapes (auto-pick would use a single full-extent step).
    out = attention_rpe(src, tgt, rpe, params, n_head, block_rows=8)
    out = jax.block_until_ready(out)

    ref = attention_rpe_reference(src, tgt, rpe, params, n_head)
    assert out.shape == (B, S, d_model)
    assert jnp.allclose(out, ref, atol=2e-3, rtol=2e-3), \
        f"max abs err {jnp.max(jnp.abs(out - ref))}"

    print("KERNEL_OK")
</pallas_src>

<mosaic_0001>
module attributes {stable_mosaic.version = 11 : i64} {
  func.func @attention_rpe_kernel(%arg0: i32, %arg1: memref<64x32xf32, #tpu.memory_space<vmem>>, %arg2: memref<64x32xf32, #tpu.memory_space<vmem>>, %arg3: memref<64x16xf32, #tpu.memory_space<vmem>>, %arg4: memref<192x32xf32, #tpu.memory_space<vmem>>, %arg5: memref<4x32xf32, #tpu.memory_space<vmem>>, %arg6: memref<8x32xf32, #tpu.memory_space<vmem>>) attributes {dimension_semantics = [#tpu.dimension_semantics<parallel>], iteration_bounds = array<i64: 2>, scalar_prefetch = 0 : i64, scratch_operands = 0 : i64, tpu.core_type = #tpu.core_type<tc>, window_params = [{transform_indices = @transform_0, window_bounds = array<i64: 64, 32>}, {transform_indices = @transform_1, window_bounds = array<i64: 64, 32>}, {transform_indices = @transform_2, window_bounds = array<i64: 64, 16>}, {pipeline_mode = #tpu.pipeline_mode<synchronous>, transform_indices = @transform_3, window_bounds = array<i64: 192, 32>}, {pipeline_mode = #tpu.pipeline_mode<synchronous>, transform_indices = @transform_4, window_bounds = array<i64: 4, 32>}, {transform_indices = @transform_5, window_bounds = array<i64: 8, 32>}]} {
    %c0 = arith.constant 0 : index
    %c0_0 = arith.constant 0 : index
    %0 = vector.load %arg1[%c0, %c0_0] : memref<64x32xf32, #tpu.memory_space<vmem>>, vector<64x32xf32>
    %c0_1 = arith.constant 0 : index
    %c0_2 = arith.constant 0 : index
    %1 = vector.load %arg2[%c0_1, %c0_2] : memref<64x32xf32, #tpu.memory_space<vmem>>, vector<64x32xf32>
    %c0_3 = arith.constant 0 : index
    %c0_4 = arith.constant 0 : index
    %2 = vector.load %arg3[%c0_3, %c0_4] : memref<64x16xf32, #tpu.memory_space<vmem>>, vector<64x16xf32>
    %c0_5 = arith.constant 0 : index
    %c0_6 = arith.constant 0 : index
    %3 = vector.load %arg4[%c0_5, %c0_6] : memref<192x32xf32, #tpu.memory_space<vmem>>, vector<32x32xf32>
    %c32 = arith.constant 32 : index
    %c0_7 = arith.constant 0 : index
    %4 = vector.load %arg4[%c32, %c0_7] : memref<192x32xf32, #tpu.memory_space<vmem>>, vector<32x32xf32>
    %c64 = arith.constant 64 : index
    %c0_8 = arith.constant 0 : index
    %5 = vector.load %arg4[%c64, %c0_8] : memref<192x32xf32, #tpu.memory_space<vmem>>, vector<32x32xf32>
    %c96 = arith.constant 96 : index
    %c0_9 = arith.constant 0 : index
    %6 = vector.load %arg4[%c96, %c0_9] : memref<192x32xf32, #tpu.memory_space<vmem>>, vector<32x32xf32>
    %c128 = arith.constant 128 : index
    %c0_10 = arith.constant 0 : index
    %7 = vector.load %arg4[%c128, %c0_10] : memref<192x32xf32, #tpu.memory_space<vmem>>, vector<32x32xf32>
    %c160 = arith.constant 160 : index
    %c0_11 = arith.constant 0 : index
    %8 = vector.load %arg4[%c160, %c0_11] : memref<192x32xf32, #tpu.memory_space<vmem>>, vector<16x32xf32>
    %c176 = arith.constant 176 : index
    %c0_12 = arith.constant 0 : index
    %9 = vector.load %arg4[%c176, %c0_12] : memref<192x32xf32, #tpu.memory_space<vmem>>, vector<16x32xf32>
    %c0_13 = arith.constant 0 : index
    %c0_14 = arith.constant 0 : index
    %10 = vector.load %arg5[%c0_13, %c0_14] : memref<4x32xf32, #tpu.memory_space<vmem>>, vector<1x32xf32>
    %c1 = arith.constant 1 : index
    %c0_15 = arith.constant 0 : index
    %11 = vector.load %arg5[%c1, %c0_15] : memref<4x32xf32, #tpu.memory_space<vmem>>, vector<1x32xf32>
    %c2 = arith.constant 2 : index
    %c0_16 = arith.constant 0 : index
    %12 = vector.load %arg5[%c2, %c0_16] : memref<4x32xf32, #tpu.memory_space<vmem>>, vector<1x32xf32>
    %c3 = arith.constant 3 : index
    %c0_17 = arith.constant 0 : index
    %13 = vector.load %arg5[%c3, %c0_17] : memref<4x32xf32, #tpu.memory_space<vmem>>, vector<1x32xf32>
    %cst = arith.constant dense<0.000000e+00> : vector<64x32xf32>
    %14 = tpu.matmul %0, %3, %cst {dimension_numbers = #tpu.dot_dimension_numbers<[1], [0], [0], [1], [0, 0, 1, 1], [], []>} : vector<64x32xf32>, vector<32x32xf32>, vector<64x32xf32> -> vector<64x32xf32>
    %15 = vector.broadcast %10 : vector<1x32xf32> to vector<64x32xf32>
    %16 = arith.addf %14, %15 : vector<64x32xf32>
    %cst_18 = arith.constant dense<0.000000e+00> : vector<64x32xf32>
    %17 = tpu.matmul %1, %4, %cst_18 {dimension_numbers = #tpu.dot_dimension_numbers<[1], [0], [0], [1], [0, 0, 1, 1], [], []>} : vector<64x32xf32>, vector<32x32xf32>, vector<64x32xf32> -> vector<64x32xf32>
    %cst_19 = arith.constant dense<0.000000e+00> : vector<64x32xf32>
    %18 = tpu.matmul %2, %8, %cst_19 {dimension_numbers = #tpu.dot_dimension_numbers<[1], [0], [0], [1], [0, 0, 1, 1], [], []>} : vector<64x16xf32>, vector<16x32xf32>, vector<64x32xf32> -> vector<64x32xf32>
    %19 = arith.addf %17, %18 : vector<64x32xf32>
    %20 = vector.broadcast %11 : vector<1x32xf32> to vector<64x32xf32>
    %21 = arith.addf %19, %20 : vector<64x32xf32>
    %cst_20 = arith.constant dense<0.000000e+00> : vector<64x32xf32>
    %22 = tpu.matmul %1, %5, %cst_20 {dimension_numbers = #tpu.dot_dimension_numbers<[1], [0], [0], [1], [0, 0, 1, 1], [], []>} : vector<64x32xf32>, vector<32x32xf32>, vector<64x32xf32> -> vector<64x32xf32>
    %cst_21 = arith.constant dense<0.000000e+00> : vector<64x32xf32>
    %23 = tpu.matmul %2, %9, %cst_21 {dimension_numbers = #tpu.dot_dimension_numbers<[1], [0], [0], [1], [0, 0, 1, 1], [], []>} : vector<64x16xf32>, vector<16x32xf32>, vector<64x32xf32> -> vector<64x32xf32>
    %24 = arith.addf %22, %23 : vector<64x32xf32>
    %25 = vector.broadcast %12 : vector<1x32xf32> to vector<64x32xf32>
    %26 = arith.addf %24, %25 : vector<64x32xf32>
    %27 = arith.mulf %16, %21 : vector<64x32xf32>
    %cst_22 = arith.constant dense<0.000000e+00> : vector<64x32xf32>
    %28 = tpu.matmul %27, %7, %cst_22 {dimension_numbers = #tpu.dot_dimension_numbers<[1], [0], [0], [1], [0, 0, 1, 1], [], []>} : vector<64x32xf32>, vector<32x32xf32>, vector<64x32xf32> -> vector<64x32xf32>
    %29 = vector.shape_cast %28 : vector<64x32xf32> to vector<8x8x32xf32>
    %cst_23 = arith.constant dense<0xFF800000> : vector<8x32xf32>
    %30 = vector.multi_reduction <maximumf>, %29, %cst_23 [1] : vector<8x8x32xf32> to vector<8x32xf32>
    %31 = vector.shape_cast %30 : vector<8x32xf32> to vector<8x1x32xf32>
    %32 = vector.broadcast %31 : vector<8x1x32xf32> to vector<8x8x32xf32>
    %33 = arith.subf %29, %32 : vector<8x8x32xf32>
    %34 = math.exp %33 : vector<8x8x32xf32>
    %cst_24 = arith.constant dense<0.000000e+00> : vector<8x32xf32>
    %35 = vector.multi_reduction <add>, %34, %cst_24 [1] : vector<8x8x32xf32> to vector<8x32xf32>
    %36 = vector.shape_cast %35 : vector<8x32xf32> to vector<8x1x32xf32>
    %37 = tpu.reciprocal %36 {approx = true} : vector<8x1x32xf32> -> vector<8x1x32xf32>
    %38 = vector.broadcast %37 : vector<8x1x32xf32> to vector<8x8x32xf32>
    %39 = arith.mulf %34, %38 : vector<8x8x32xf32>
    %40 = vector.shape_cast %26 : vector<64x32xf32> to vector<8x8x32xf32>
    %41 = arith.mulf %39, %40 : vector<8x8x32xf32>
    %cst_25 = arith.constant dense<0.000000e+00> : vector<8x32xf32>
    %42 = vector.multi_reduction <add>, %41, %cst_25 [1] : vector<8x8x32xf32> to vector<8x32xf32>
    %cst_26 = arith.constant dense<0.000000e+00> : vector<8x32xf32>
    %43 = tpu.matmul %42, %6, %cst_26 {dimension_numbers = #tpu.dot_dimension_numbers<[1], [0], [0], [1], [0, 0, 1, 1], [], []>} : vector<8x32xf32>, vector<32x32xf32>, vector<8x32xf32> -> vector<8x32xf32>
    %44 = vector.broadcast %13 : vector<1x32xf32> to vector<8x32xf32>
    %45 = arith.addf %43, %44 : vector<8x32xf32>
    %c0_27 = arith.constant 0 : index
    %c0_28 = arith.constant 0 : index
    %46 = vector.load %arg6[%c0_27, %c0_28] : memref<8x32xf32, #tpu.memory_space<vmem>>, vector<8x32xf32>
    tpu.vector_store %arg6[%c0_27, %c0_28], %45 {strides = array<i32>} : memref<8x32xf32, #tpu.memory_space<vmem>>, vector<8x32xf32>,
    return
  }
  func.func @transform_0(%arg0: i32) -> (i32, i32) {
    %c0_i32 = arith.constant 0 : i32
    %c0_i32_0 = arith.constant 0 : i32
    return %arg0, %c0_i32 : i32, i32
  }
  func.func @transform_1(%arg0: i32) -> (i32, i32) {
    %c0_i32 = arith.constant 0 : i32
    %c0_i32_0 = arith.constant 0 : i32
    return %arg0, %c0_i32 : i32, i32
  }
  func.func @transform_2(%arg0: i32) -> (i32, i32) {
    %c0_i32 = arith.constant 0 : i32
    %c0_i32_0 = arith.constant 0 : i32
    return %arg0, %c0_i32 : i32, i32
  }
  func.func @transform_3(%arg0: i32) -> (i32, i32) {
    %c0_i32 = arith.constant 0 : i32
    %c0_i32_0 = arith.constant 0 : i32
    %c0_i32_1 = arith.constant 0 : i32
    return %c0_i32, %c0_i32_0 : i32, i32
  }
  func.func @transform_4(%arg0: i32) -> (i32, i32) {
    %c0_i32 = arith.constant 0 : i32
    %c0_i32_0 = arith.constant 0 : i32
    %c0_i32_1 = arith.constant 0 : i32
    return %c0_i32, %c0_i32_0 : i32, i32
  }
  func.func @transform_5(%arg0: i32) -> (i32, i32) {
    %c0_i32 = arith.constant 0 : i32
    %c0_i32_0 = arith.constant 0 : i32
    return %arg0, %c0_i32 : i32, i32
  }
}

</mosaic_0001>

<bundles_post_ra>
// kernel: tpu_custom_call.1
= control target key start
LH: loop header
LB: loop body
LE: loop exit
PB: predicated region body
PF: predicated region fallthrough
CT: control target
= control target key end

     0   :  { %10 = vsyncpa [#allocation3], 0  ;;  %s2291_s0 = inlined_call_operand.vmem [shape: f32[128,32], index: 0, kind: input, shape index: {}]   ;;  %s2292_s1 = inlined_call_operand.vmem [shape: f32[128,32], index: 1, kind: input, shape index: {}]   ;;  %s2293_s2 = inlined_call_operand.vmem [shape: f32[128,16], index: 2, kind: input, shape index: {}]   ;;  %s2294_s3 = inlined_call_operand.vmem [shape: f32[192,32], index: 3, kind: input, shape index: {}]   ;;  %s2295_s4 = inlined_call_operand.vmem [shape: f32[4,32], index: 4, kind: input, shape index: {}]   ;;  %s2296_s5 = inlined_call_operand.hbm [shape: f32[16,32], index: 5, kind: output, shape index: {}]  }
   0x1   :  { %12 = vsyncpa [#allocation3 + $0x1], 0  ;;  %s1929_s18 = smov 0   ;;  %s1931_s19 = smov 0  }
   0x2   :  { %s1933_s20 = smov 0   ;;  %s1935_s21 = smov 0  }
   0x3 LB: > { %s1950_s22 = sadd.s32 4294967295, %s1894_s21   ;;  %s1497_s23 = sadd.s32 4294967294, %s1894_s21   ;;  %s1894_s21 = sphi %s1935_s21, %s2302_s21   ;;  %s1890_s20 = sphi %s1933_s20, %s2301_s20   ;;  %s1886_s19 = sphi %s1931_s19, %s2300_s19   ;;  %s1882_s18 = sphi %s1929_s18, %s2299_s18  }
   0x4   : > { %s1954_s24 = sadd.s32 1, %s1894_s21   ;;  %s145_s25 = sadd.s32 1, %s1890_s20 }
   0x5   : > { %s142_s26 = ssub.s32 %s1894_s21, %s1954_s24  ;;  %p155_p0 = scmp.ne.s32.totalorder %s1890_s20, %s1886_s19 }
   0x6   : > { %p143_p1 = scmp.eq.s32.totalorder %s142_s26, 0  ;;  %p156_p2 = scmp.eq.s32.totalorder %s1950_s22, 1 }
   0x7   : > { %p161_p3 = scmp.ne.s32.totalorder %s1886_s19, %s1882_s18  ;;  %p162_p4 = scmp.eq.s32.totalorder %s1497_s23, 1 }
   0x8   : > { %s1965_s27 = scalar_select %p143_p1, %s1890_s20, %s145_s25  }
   0x9   : > { %p1967_p5 = por %p156_p2, %p155_p0  ;;  %p1971_p6 = por %p162_p4, %p161_p3 }
   0xa   : > { %p1500_p7 = scmp.ge.s32.totalorder %s1894_s21, 1  ;;  %p213_p8 = scmp.lt.s32.totalorder %s1894_s21, 3 }
   0xc   : > { %p214_p9 = pnand %p1500_p7, %p213_p8 }
   0xd   : > { %s1502_s9 = sshll.u32 (!%p214_p9), %s1950_s22, 3 }
   0xe   : > { %217 = sbr.rel (%p214_p9) target bundleno = 739 (0x2e3), region = 40  ;;  %p252_p10 = scmp.lt.s32.totalorder (!%p214_p9), %s1502_s9, 15 }
  0x13   : > { %v314_v0 = vld [vmem:[%s2294_s3 + $0xa8] sm:$0xff]  ;;  %v313_v1 = vld [vmem:[%s2294_s3 + $0xa0] sm:$0xff]  ;;  %v296_v2 = vld [vmem:[%s2294_s3 + $0x18] sm:$0xff]  ;;  %s2304_s9 = smov (!%p252_p10, %s1502_s9), 15  ;;  %vm455_vm0 = vcmask 130048   ;;  %vm325_vm1 = vcmask 261120  }
  0x14   : > { %1658 = vmatprep.subr.mxu1 %v314_v0  ;;  %v300_v3 = vld [vmem:[%s2294_s3 + $0x38] sm:$0xff]  ;;  %1638 = vmatprep.subr.mxu0 %v296_v2  ;;  %v295_v4 = vld [vmem:[%s2294_s3 + $0x10] sm:$0xff]  ;;  %v294_v5 = vld [vmem:[%s2294_s3 + $0x8] sm:$0xff]  ;;  %s1996_s23 = sshll.u32 %s2304_s9, 3  ;;  %vm1897_vm2 = vmmov 0   ;;  %vm1313_vm3 = vcmask 1041409  }
  0x15   : > { %1659 = vmatpush3.msra.mxu1 %v314_v0  ;;  %1639 = vmatpush3.msra.mxu0 %v296_v2  ;;  %v293_v6 = vld [vmem:[%s2294_s3] sm:$0xff]  ;;  %s2005_s7 = scalar_lea.vmem %s2293_s2, %s1996_s23  ;;  %s2011_s10 = scalar_lea.vmem %s2291_s0, %s1996_s23  ;;  %v299_v10 = vld [vmem:[%s2294_s3 + $0x30] sm:$0xff]  ;;  %v298_v13 = vld [vmem:[%s2294_s3 + $0x28] sm:$0xff]  ;;  %vm1315_vm4 = vcmask 1042434   ;;  %vm1317_vm5 = vcmask 1043459   ;;  %vm1319_vm6 = vcmask 1044484  }
  0x16   : > { %1660 = vmatprep.subr.mxu1 %v313_v1  ;;  %1640 = vmatprep.subr.mxu0 %v295_v4  ;;  %v285_v7 = vld [vmem:[%s2005_s7] sm:$0xff]  ;;  %v2015_v8 = vld [vmem:[%s2005_s7 + $0x8] sm:$0xff]  ;;  %v2018_v9 = vld [vmem:[%s2005_s7 + $0x10] sm:$0xff]  ;;  %s261_s6 = scalar_lea.vmem %s2292_s1, %s1996_s23  ;;  %vm1321_vm7 = vcmask 1045509   ;;  %vm1323_vm8 = vcmask 1046534   ;;  %vm1325_vm9 = vcmask 1047559  }
  0x17   : > { %1661 = vmatpush3.msra.mxu1 %v313_v1  ;;  %1641 = vmatpush3.msra.mxu0 %v295_v4  ;;  %v269_v11 = vld [vmem:[%s2011_s10] sm:$0xff]  ;;  %v2030_v12 = vld [vmem:[%s2005_s7 + $0x18] sm:$0xff]  ;;  %v270_v14 = vld [vmem:[%s2011_s10 + $0x8] sm:$0xff]  ;;  %s248_s23 = sand.u32 1, %s1886_s19  }
  0x18   : > { %1674 = vmatprep.subr.mxu1 %v300_v3  ;;  %1642 = vmatprep.subr.mxu0 %v294_v5  ;;  %v2037_v15 = vld [vmem:[%s2005_s7 + $0x20] sm:$0xff]  ;;  %v271_v17 = vld [vmem:[%s2011_s10 + $0x10] sm:$0xff]  ;;  %v272_v18 = vld [vmem:[%s2011_s10 + $0x18] sm:$0xff]  ;;  %s1401_s16 = scalar_lea.sflag [#allocation3], %s248_s23 }
  0x19   : > { %1643 = vmatpush3.msra.mxu0 %v294_v5  ;;  %1662 = vmatprep.mubr.msk.f32.mxu1 %vm455_vm0, %v285_v7  ;;  %v297_v16 = vld [vmem:[%s2294_s3 + $0x20] sm:$0xff]  ;;  %v2051_v19 = vld [vmem:[%s2005_s7 + $0x28] sm:$0xff]  ;;  %v2055_v21 = vld [vmem:[%s2005_s7 + $0x30] sm:$0xff] }
  0x1a   : > { %1644 = vmatprep.subr.mxu0 %v293_v6  ;;  %1663 = vmatmul.mubr.msk.f32.vlgmr.msra.gmra.mxu1 %vm455_vm0, %v2015_v8  ;;  %v273_v20 = vld [vmem:[%s2011_s10 + $0x20] sm:$0xff]  ;;  %v316_v22 = vld [vmem:[%s2294_s3 + $0xb8] sm:$0xff]  ;;  %v274_v23 = vld [vmem:[%s2011_s10 + $0x28] sm:$0xff] }
  0x1b   : > { %1645 = vmatpush3.msra.mxu0 %v293_v6  ;;  %1675 = vmatpush3.msra.mxu1 %v300_v3  ;;  %v292_v24 = vld [vmem:[%s2005_s7 + $0x38] sm:$0xff]  ;;  %v275_v25 = vld [vmem:[%s2011_s10 + $0x30] sm:$0xff]  ;;  %v277_v26 = vld [vmem:[%s261_s6] sm:$0xff]  ;;  %s1501_s7 = sshll.u32 %s248_s23, 3 }
  0x1c   : > { %1665 = vmatprep.mubr.msk.f32.mxu1 %vm455_vm0, %v2018_v9  ;;  %1676 = vmatprep.subr.mxu1 %v299_v10  ;;  %v276_v27 = vld [vmem:[%s2011_s10 + $0x38] sm:$0xff]  ;;  %v278_v28 = vld [vmem:[%s261_s6 + $0x8] sm:$0xff]  ;;  %v279_v29 = vld [vmem:[%s261_s6 + $0x10] sm:$0xff]  ;;  %s1562_s10 = sshll.u32 %s1950_s22, 7  ;;  %s250_s11 = scalar_lea.vmem [#allocation2], %s1501_s7 }
  0x1d   : > { %1646 = vmatprep.mubr.msk.f32.mxu0 %vm325_vm1, %v269_v11  ;;  %1677 = vmatpush3.msra.mxu1 %v299_v10  ;;  %v280_v30 = vld [vmem:[%s261_s6 + $0x18] sm:$0xff]  ;;  %v281_v31 = vld [vmem:[%s261_s6 + $0x20] sm:$0xff]  ;;  %v282_v32 = vld [vmem:[%s261_s6 + $0x28] sm:$0xff]  ;;  %s1414_s12 = sshll.u32 %s250_s11, 4  ;;  %s2255_s15 = scalar_lea.hbm %s2296_s5, %s1562_s10  ;;  %s1415_s12 = int_to_ptr.vmem [resolvable:$true] %s1414_s12 }
  0x1e   : > { %1647 = vmatmul.mubr.msk.f32.vlgmr.msra.gmra.mxu0 %vm325_vm1, %v270_v14  ;;  %1666 = vmatmul.mubr.msk.f32.gmra.mxu1 %vm455_vm0, %v2030_v12  ;;  %v283_v33 = vld [vmem:[%s261_s6 + $0x30] sm:$0xff]  ;;  %v284_v34 = vld [vmem:[%s261_s6 + $0x38] sm:$0xff]  ;;  %v302_v38 = vld [vmem:[%s2294_s3 + $0x48] sm:$0xff]  ;;  %s1834_s17 = scalar_lea.vmem %s1415_s12, 128  ;;  %s1898_s22 = smov [#allocation2]  }
  0x1f   : > { %1678 = vmatprep.subr.mxu1 %v298_v13  ;;  %1668 = vmatprep.mubr.msk.f32.mxu1 %vm455_vm0, %v2037_v15  ;;  %v304_v35 = vld [vmem:[%s2294_s3 + $0x58] sm:$0xff]  ;;  %v315_v36 = vld [vmem:[%s2294_s3 + $0xb0] sm:$0xff]  ;;  %v301_v39 = vld [vmem:[%s2294_s3 + $0x40] sm:$0xff]  ;;  %p1835_p11 = scmp.ne.s32.totalorder %s1415_s12, %s1834_s17  ;;  %s1838_s25 = sshll.u32 %s1898_s22, 4  ;;  %s1839_s25 = int_to_ptr.vmem [resolvable:$false] %s1838_s25 }
  0x20   : > { %1679 = vmatpush3.msra.mxu1 %v298_v13  ;;  %1649 = vmatprep.mubr.msk.f32.mxu0 %vm325_vm1, %v271_v17  ;;  %v303_v37 = vld [vmem:[%s2294_s3 + $0x50] sm:$0xff]  ;;  %v312_v40 = vld [vmem:[%s2294_s3 + $0x98] sm:$0xff]  ;;  %v310_v42 = vld [vmem:[%s2294_s3 + $0x88] sm:$0xff]  ;;  %s1840_s26 = scalar_lea.vmem %s1839_s25, 256  ;;  %p1841_p0 = scmp.lt.s32.totalorder %s1415_s12, %s1839_s25 }
  0x21   : > { %1680 = vmatprep.subr.mxu1 %v297_v16  ;;  %1694 = vmatprep.subr.mxu0 %v316_v22  ;;  %v311_v41 = vld [vmem:[%s2294_s3 + $0x90] sm:$0xff]  ;;  %v309_v43 = vld [vmem:[%s2294_s3 + $0x80] sm:$0xff]  ;;  %p1836_p12 = pnand %p1835_p11, %p1967_p5  ;;  %p1842_p1 = scmp.lt.s32.totalorder %s1840_s26, %s1834_s17 }
  0x22   : > { %1681 = vmatpush3.msra.mxu1 %v297_v16  ;;  %1650 = vmatmul.mubr.msk.f32.gmra.mxu0 %vm325_vm1, %v272_v18  ;;  %v1508_v57 = vld [vmem:[%s2295_s4] ss:$0 sm:$0xff]  ;;  %v1533_v58 = vld [vmem:[%s2295_s4 + $0x1] ss:$0 sm:$0xff] }
  0x23   : > { %1669 = vmatmul.mubr.msk.f32.gmra.mxu1 %vm455_vm0, %v2051_v19  ;;  %1652 = vmatprep.mubr.msk.f32.mxu0 %vm325_vm1, %v273_v20  ;;  %p1837_p13 = pneg %p1836_p12  ;;  %p1843_p2 = por %p1842_p1, %p1841_p0 }
  0x24   : > { %1671 = vmatprep.mubr.msk.f32.mxu1 %vm455_vm0, %v2055_v21  ;;  %1695 = vmatpush3.msra.mxu0 %v316_v22 }
  0x25   : > { %1710 = vmatprep.subr.mxu1 %v304_v35  ;;  %1696 = vmatprep.subr.mxu0 %v315_v36  ;;  %p1844_p3 = pnand %p1843_p2, %p1837_p13 }
  0x26   : > { %1653 = vmatmul.mubr.msk.f32.gmra.mxu0 %vm325_vm1, %v274_v23 }
  0x27   : > { %1672 = vmatmul.mubr.msk.f32.gmra.mxu1 %vm455_vm0, %v292_v24  ;;  %1655 = vmatprep.mubr.msk.f32.mxu0 %vm325_vm1, %v275_v25 }
  0x28   : > { %1682 = vmatprep.mubr.msk.f32.mxu1 %vm325_vm1, %v277_v26  ;;  %1697 = vmatpush3.msra.mxu0 %v315_v36 }
  0x29   : > { %1730 = vmatprep.subr.mxu0 %v312_v40 }
  0x2a   : > { %1656 = vmatmul.mubr.msk.f32.gmra.mxu0 %vm325_vm1, %v276_v27 }
  0x2b   : > { %1683 = vmatmul.mubr.msk.f32.vlgmr.msra.gmra.mxu1 %vm325_vm1, %v278_v28  ;;  %1698 = vmatprep.mubr.msk.f32.mxu0 %vm455_vm0, %v285_v7 }
  0x2c   : > { %1685 = vmatprep.mubr.msk.f32.mxu1 %vm325_vm1, %v279_v29  ;;  %1711 = vmatpush3.msra.mxu1 %v304_v35 }
  0x2d   : > { %1712 = vmatprep.subr.mxu1 %v303_v37 }
  0x2e   : > { %1713 = vmatpush3.msra.mxu1 %v303_v37  ;;  %1699 = vmatmul.mubr.msk.f32.vlgmr.msra.gmra.mxu0 %vm455_vm0, %v2015_v8 }
  0x2f   : > { %1686 = vmatmul.mubr.msk.f32.gmra.mxu1 %vm325_vm1, %v280_v30  ;;  %1714 = vmatprep.subr.mxu1 %v302_v38 }
  0x30   : > { %1688 = vmatprep.mubr.msk.f32.mxu1 %vm325_vm1, %v281_v31  ;;  %1701 = vmatprep.mubr.msk.f32.mxu0 %vm455_vm0, %v2018_v9 }
  0x31   : > { %1715 = vmatpush3.msra.mxu1 %v302_v38  ;;  %1731 = vmatpush3.msra.mxu0 %v312_v40  ;;  %v308_v38 = vld [vmem:[%s2294_s3 + $0x78] sm:$0xff]  ;;  %v307_v40 = vld [vmem:[%s2294_s3 + $0x70] sm:$0xff] }
  0x32   : > { %1716 = vmatprep.subr.mxu1 %v301_v39  ;;  %1702 = vmatmul.mubr.msk.f32.gmra.mxu0 %vm455_vm0, %v2030_v12 }
  0x33   : > { %1689 = vmatmul.mubr.msk.f32.gmra.mxu1 %vm325_vm1, %v282_v32  ;;  %1704 = vmatprep.mubr.msk.f32.mxu0 %vm455_vm0, %v2037_v15 }
  0x34   : > { %1691 = vmatprep.mubr.msk.f32.mxu1 %vm325_vm1, %v283_v33  ;;  %1717 = vmatpush3.msra.mxu1 %v301_v39  ;;  %v1896_v39 = vmov 0.0  }
  0x35   : > { %1732 = vmatprep.subr.mxu0 %v311_v41  ;;  %1750 = vmatprep.subr.mxu1 %v1896_v39 }
  0x36   : > { %1705 = vmatmul.mubr.msk.f32.gmra.mxu0 %vm455_vm0, %v2051_v19 }
  0x37   : > { %1692 = vmatmul.mubr.msk.f32.gmra.mxu1 %vm325_vm1, %v284_v34  ;;  %1707 = vmatprep.mubr.msk.f32.mxu0 %vm455_vm0, %v2055_v21 }
  0x38   : > { %1718 = vmatprep.mubr.msk.f32.mxu1 %vm325_vm1, %v277_v26  ;;  %1733 = vmatpush3.msra.mxu0 %v311_v41  ;;  %v306_v41 = vld [vmem:[%s2294_s3 + $0x68] sm:$0xff] }
  0x39   : > { %1734 = vmatprep.subr.mxu0 %v310_v42 }
  0x3a   : > { %1708 = vmatmul.mubr.msk.f32.gmra.mxu0 %vm455_vm0, %v292_v24 }
  0x3b   : > { %1719 = vmatmul.mubr.msk.f32.vlgmr.msra.gmra.mxu1 %vm325_vm1, %v278_v28  ;;  %1735 = vmatpush3.msra.mxu0 %v310_v42  ;;  %v305_v42 = vld [vmem:[%s2294_s3 + $0x60] sm:$0xff] }
  0x3c   : > { %1721 = vmatprep.mubr.msk.f32.mxu1 %vm325_vm1, %v279_v29  ;;  %1736 = vmatprep.subr.mxu0 %v309_v43 }
  0x3d   : > { %1737 = vmatpush3.msra.mxu0 %v309_v43  ;;  %1751 = vmatpush3.msra.mxu1 %v308_v38 }
  0x3e   : > { %1752 = vmatprep.subr.mxu1 %v1896_v39 }
  0x3f   : > { %1722 = vmatmul.mubr.msk.f32.gmra.mxu1 %vm325_vm1, %v280_v30 }
  0x40   : > { %1724 = vmatprep.mubr.msk.f32.mxu1 %vm325_vm1, %v281_v31  ;;  %1753 = vmatpush3.msra.mxu1 %v307_v40 }
  0x41   : > { %1754 = vmatprep.subr.mxu1 %v1896_v39 }
  0x42   : > { %1755 = vmatpush3.msra.mxu1 %v306_v41 }
  0x43   : > { %1725 = vmatmul.mubr.msk.f32.gmra.mxu1 %vm325_vm1, %v282_v32  ;;  %1756 = vmatprep.subr.mxu1 %v1896_v39 }
  0x44   : > { %1727 = vmatprep.mubr.msk.f32.mxu1 %vm325_vm1, %v283_v33  ;;  %1757 = vmatpush3.msra.mxu1 %v305_v42 }
  0x47   : > { %1728 = vmatmul.mubr.msk.f32.gmra.mxu1 %vm325_vm1, %v284_v34 }
  0x48   : > { %1758 = vmatprep.mubr.msk.f32.mxu1 %vm1897_vm2, %v1896_v39 }
  0xda   : > { %v1664_v44 = vpop.f32.mrf.mxu1 }
  0xdc   : > { %v546_v45 = vpop.f32.mrf.mxu1 }
  0xde   : > { %v1648_v46 = vpop.f32.mrf.mxu0  ;;  %v1667_v47 = vpop.f32.mrf.mxu1 }
  0xdf   : > { %v422_v63 = vadd.f32 %v1648_v46, %v1508_v57 }
  0xe0   : > { %v556_v48 = vpop.f32.mrf.mxu1  ;;  %v416_v49 = vpop.f32.mrf.mxu0 }
  0xe1   : > { %v417_v2 = vadd.f32 %v1508_v57, %v416_v49 }
  0xe2   : > { %v1651_v52 = vpop.f32.mrf.mxu0 }
  0xe3   : > { %v1670_v50 = vpop.f32.mrf.mxu1  ;;  %v432_v10 = vadd.f32 %v1651_v52, %v1508_v57 }
  0xe4   : > { %v426_v55 = vpop.f32.mrf.mxu0 }
  0xe5   : > { %v566_v51 = vpop.f32.mrf.mxu1  ;;  %v427_v13 = vadd.f32 %v1508_v57, %v426_v55 }
  0xe6   : > { %v1654_v61 = vpop.f32.mrf.mxu0 }
  0xe7   : > { %v1673_v53 = vpop.f32.mrf.mxu1  ;;  %v442_v21 = vadd.f32 %v1654_v61, %v1508_v57 }
  0xe8   : > { %v436_v6 = vpop.f32.mrf.mxu0 }
  0xe9   : > { %v576_v54 = vpop.f32.mrf.mxu1  ;;  %v437_v24 = vadd.f32 %v1508_v57, %v436_v6 }
  0xea   : > { %v1657_v17 = vpop.f32.mrf.mxu0 }
  0xeb   : > { %v1684_v56 = vpop.f32.mrf.mxu1  ;;  %v452_v32 = vadd.f32 %v1657_v17, %v1508_v57 }
  0xec   : > { %v681_v59 = vadd.f32 %v1684_v56, %v1664_v44  ;;  %v446_v27 = vpop.f32.mrf.mxu0 }
  0xed   : > { %v675_v60 = vpop.f32.mrf.mxu1  ;;  %v447_v34 = vadd.f32 %v1508_v57, %v446_v27 }
  0xee   : > { %v676_v62 = vadd.f32 %v675_v60, %v546_v45  ;;  %v719_v0 = vadd.f32 %v1533_v58, %v681_v59  ;;  %v2162_v43 = vpop.f32.mrf.mxu0 }
  0xef   : > { %v1687_v1 = vpop.f32.mrf.mxu1 }
  0xf0   : > { %v718_v3 = vadd.f32 %v1533_v58, %v676_v62  ;;  %v691_v4 = vadd.f32 %v1687_v1, %v1667_v47  ;;  %v949_v9 = vmul.f32 %v719_v0, %v422_v63  ;;  %v2164_v44 = vpop.f32.mrf.mxu0 }
  0xf1   : > { %v685_v5 = vpop.f32.mrf.mxu1 }
  0xf2   : > { %v948_v7 = vmul.f32 %v718_v3, %v417_v2  ;;  %v686_v8 = vadd.f32 %v685_v5, %v556_v48  ;;  %v721_v11 = vadd.f32 %v1533_v58, %v691_v4  ;;  %v2166_v45 = vpop.f32.mrf.mxu0 }
  0xf3   : > { %v1690_v12 = vpop.f32.mrf.mxu1 }
  0xf4   : > { %v720_v14 = vadd.f32 %v1533_v58, %v686_v8  ;;  %v701_v15 = vadd.f32 %v1690_v12, %v1670_v50  ;;  %1738 = vmatprep.mubr.msk.f32.mxu0 %vm325_vm1, %v948_v7  ;;  %v951_v20 = vmul.f32 %v721_v11, %v432_v10  ;;  %v2168_v46 = vpop.f32.mrf.mxu0 }
  0xf5   : > { %v695_v16 = vpop.f32.mrf.mxu1  ;;  %1739 = vmatmul.mubr.msk.f32.vlgmr.msra.gmra.mxu0 %vm325_vm1, %v949_v9 }
  0xf6   : > { %v950_v18 = vmul.f32 %v720_v14, %v427_v13  ;;  %v696_v19 = vadd.f32 %v695_v16, %v566_v51  ;;  %v723_v22 = vadd.f32 %v1533_v58, %v701_v15  ;;  %v2170_v47 = vpop.f32.mrf.mxu0 }
  0xf7   : > { %v1693_v23 = vpop.f32.mrf.mxu1 }
  0xf8   : > { %v722_v25 = vadd.f32 %v1533_v58, %v696_v19  ;;  %v711_v26 = vadd.f32 %v1693_v23, %v1673_v53  ;;  %1741 = vmatprep.mubr.msk.f32.mxu0 %vm325_vm1, %v950_v18  ;;  %v953_v31 = vmul.f32 %v723_v22, %v442_v21  ;;  %v2172_v48 = vpop.f32.mrf.mxu0 }
  0xf9   : > { %v705_v28 = vpop.f32.mrf.mxu1  ;;  %1742 = vmatmul.mubr.msk.f32.gmra.mxu0 %vm325_vm1, %v951_v20 }
  0xfa   : > { %v952_v29 = vmul.f32 %v722_v25, %v437_v24  ;;  %v706_v30 = vadd.f32 %v705_v28, %v576_v54  ;;  %v725_v33 = vadd.f32 %v1533_v58, %v711_v26  ;;  %v2174_v49 = vpop.f32.mrf.mxu0 }
  0xfc   : > { %v724_v35 = vadd.f32 %v1533_v58, %v706_v30  ;;  %1744 = vmatprep.mubr.msk.f32.mxu0 %vm325_vm1, %v952_v29  ;;  %v955_v37 = vmul.f32 %v725_v33, %v452_v32  ;;  %v2176_v50 = vpop.f32.mrf.mxu0 }
  0xfd   : > { %1745 = vmatmul.mubr.msk.f32.gmra.mxu0 %vm325_vm1, %v953_v31 }
  0xfe   : > { %v954_v36 = vmul.f32 %v724_v35, %v447_v34 }
 0x100   : > { %1747 = vmatprep.mubr.msk.f32.mxu0 %vm325_vm1, %v954_v36 }
 0x101   : > { %1748 = vmatmul.mubr.msk.f32.gmra.mxu0 %vm325_vm1, %v955_v37 }
 0x1b5   : > { %v1740_v51 = vpop.f32.mrf.mxu0 }
 0x1b6   : > { %v1092_v52 = vsel %vm325_vm1, %v1740_v51, -inf }
 0x1b7   : > { %v1093_v53 = vrot.slane %v1092_v52, 4  ;;  %v1046_v54 = vpop.f32.mrf.mxu0 }
 0x1b8   : > { %v1085_v55 = vsel %vm325_vm1, %v1046_v54, -inf }
 0x1b9   : > { %v1094_v56 = vmax.f32 %v1092_v52, %v1093_v53  ;;  %v1086_v57 = vrot.slane %v1085_v55, 4  ;;  %v1743_v58 = vpop.f32.mrf.mxu0 }
 0x1ba   : > { %v1106_v59 = vsel %vm325_vm1, %v1743_v58, -inf }
 0x1bb   : > { %v1095_v60 = vrot.slane %v1094_v56, 2  ;;  %v1087_v61 = vmax.f32 %v1085_v55, %v1086_v57  ;;  %v1107_v62 = vrot.slane %v1106_v59, 4  ;;  %v1056_v63 = vpop.f32.mrf.mxu0 }
 0x1bc   : > { %v1099_v0 = vsel %vm325_vm1, %v1056_v63, -inf }
 0x1bd   : > { %v1096_v1 = vmax.f32 %v1094_v56, %v1095_v60  ;;  %v1088_v2 = vrot.slane %v1087_v61, 2  ;;  %v1108_v3 = vmax.f32 %v1106_v59, %v1107_v62  ;;  %v1100_v4 = vrot.slane %v1099_v0, 4  ;;  %v1746_v5 = vpop.f32.mrf.mxu0 }
 0x1be   : > { %v1120_v6 = vsel %vm325_vm1, %v1746_v5, -inf }
 0x1bf   : > { %v1097_v7 = vrot.slane %v1096_v1, 1  ;;  %v1089_v8 = vmax.f32 %v1087_v61, %v1088_v2  ;;  %v1109_v9 = vrot.slane %v1108_v3, 2  ;;  %v1101_v10 = vmax.f32 %v1099_v0, %v1100_v4  ;;  %v1066_v11 = vpop.f32.mrf.mxu0 }
 0x1c0   : > { %v1121_v12 = vrot.slane %v1120_v6, 4  ;;  %v1113_v13 = vsel %vm325_vm1, %v1066_v11, -inf }
 0x1c1   : > { %v1098_v14 = vmax.f32 %v1096_v1, %v1097_v7  ;;  %v1090_v15 = vrot.slane %v1089_v8, 1  ;;  %v1110_v16 = vmax.f32 %v1108_v3, %v1109_v9  ;;  %v1102_v17 = vrot.slane %v1101_v10, 2  ;;  %v1749_v18 = vpop.f32.mrf.mxu0 }
 0x1c2   : > { %v1122_v19 = vmax.f32 %v1120_v6, %v1121_v12  ;;  %v1114_v20 = vrot.slane %v1113_v13, 4  ;;  %v1134_v21 = vsel %vm325_vm1, %v1749_v18, -inf }
 0x1c3   : > { %v1142_v22 = vsub.f32 %v1740_v51, %v1098_v14  ;;  %v1091_v23 = vmax.f32 %v1089_v8, %v1090_v15  ;;  %v1111_v24 = vrot.slane %v1110_v16, 1  ;;  %v1103_v25 = vmax.f32 %v1101_v10, %v1102_v17  ;;  %v1076_v26 = vpop.f32.mrf.mxu0 }
 0x1c4   : > { %v1123_v27 = vrot.slane %v1122_v19, 2  ;;  %v1115_v28 = vmax.f32 %v1113_v13, %v1114_v20  ;;  %v1135_v29 = vrot.slane %v1134_v21, 4  ;;  %v1127_v30 = vsel %vm325_vm1, %v1076_v26, -inf }
 0x1c5   : > { %v1151_v31 = vmul.f32 1.442695, %v1142_v22  ;;  %v1141_v32 = vsub.f32 %v1046_v54, %v1091_v23  ;;  %v1112_v33 = vmax.f32 %v1110_v16, %v1111_v24  ;;  %v1104_v34 = vrot.slane %v1103_v25, 1  ;;  %v1720_v24 = vpop.f32.mrf.mxu1 }
 0x1c6   : > { %v1124_v35 = vmax.f32 %v1122_v19, %v1123_v27  ;;  %v1116_v36 = vrot.slane %v1115_v28, 2  ;;  %v1136_v37 = vmax.f32 %v1134_v21, %v1135_v29  ;;  %v1128_v38 = vrot.slane %v1127_v30, 4 }
 0x1c7   : > { %1802 = vpow2.f32 %v1151_v31  ;;  %v1149_v39 = vmul.f32 1.442695, %v1141_v32  ;;  %v1144_v40 = vsub.f32 %v1743_v58, %v1112_v33  ;;  %v1105_v41 = vmax.f32 %v1103_v25, %v1104_v34 }
 0x1c8   : > { %v1125_v42 = vrot.slane %v1124_v35, 1  ;;  %v1117_v51 = vmax.f32 %v1115_v28, %v1116_v36  ;;  %v1137_v52 = vrot.slane %v1136_v37, 2  ;;  %v1129_v53 = vmax.f32 %v1127_v30, %v1128_v38  ;;  %v897_v36 = vpop.f32.mrf.mxu1 }
 0x1c9   : > { %1804 = vpow2.f32 %v1149_v39  ;;  %v1155_v55 = vmul.f32 1.442695, %v1144_v40  ;;  %v1143_v56 = vsub.f32 %v1056_v63, %v1105_v41 }
 0x1ca   : > { %v1126_v57 = vmax.f32 %v1124_v35, %v1125_v42  ;;  %v1118_v59 = vrot.slane %v1117_v51, 1  ;;  %v1138_v54 = vmax.f32 %v1136_v37, %v1137_v52  ;;  %v1130_v60 = vrot.slane %v1129_v53, 2 }
 0x1cb   : > { %1806 = vpow2.f32 %v1155_v55  ;;  %v1153_v61 = vmul.f32 1.442695, %v1143_v56 }
 0x1cc   : > { %v1146_v62 = vsub.f32 %v1746_v5, %v1126_v57  ;;  %v1119_v0 = vmax.f32 %v1117_v51, %v1118_v59  ;;  %v1139_v1 = vrot.slane %v1138_v54, 1  ;;  %v1131_v2 = vmax.f32 %v1129_v53, %v1130_v60  ;;  %v1723_v59 = vpop.f32.mrf.mxu1 }
 0x1cd   : > { %1808 = vpow2.f32 %v1153_v61 }
 0x1ce   : > { %v1159_v58 = vmul.f32 1.442695, %v1146_v62  ;;  %v1145_v3 = vsub.f32 %v1066_v11, %v1119_v0  ;;  %v1140_v4 = vmax.f32 %v1138_v54, %v1139_v1  ;;  %v1132_v6 = vrot.slane %v1131_v2, 1 }
 0x1d0   : > { %1810 = vpow2.f32 %v1159_v58  ;;  %v1157_v7 = vmul.f32 1.442695, %v1145_v3  ;;  %v1148_v8 = vsub.f32 %v1749_v18, %v1140_v4  ;;  %v1133_v9 = vmax.f32 %v1131_v2, %v1132_v6 }
 0x1d2   : > { %1812 = vpow2.f32 %v1157_v7  ;;  %v1163_v63 = vmul.f32 1.442695, %v1148_v8  ;;  %v1147_v10 = vsub.f32 %v1076_v26, %v1133_v9  ;;  %v907_v8 = vpop.f32.mrf.mxu1 }
 0x1d4   : > { %v2186_v12 = vpop.eup %1802  ;;  %1814 = vpow2.f32 %v1163_v63  ;;  %v1161_v13 = vmul.f32 1.442695, %v1147_v10 }
 0x1d5   : > { %v1172_v5 = vsel %vm325_vm1, %v2186_v12, 0.0 }
 0x1d6   : > { %v2190_v14 = vpop.eup %1804  ;;  %v1173_v15 = vrot.slane %v1172_v5, 4  ;;  %1816 = vpow2.f32 %v1161_v13 }
 0x1d7   : > { %v1165_v11 = vsel %vm325_vm1, %v2190_v14, 0.0 }
 0x1d8   : > { %v2194_v16 = vpop.eup %1806  ;;  %v1174_v17 = vadd.f32 %v1173_v15, %v1172_v5  ;;  %v1166_v18 = vrot.slane %v1165_v11, 4 }
 0x1d9   : > { %v1186_v19 = vsel %vm325_vm1, %v2194_v16, 0.0 }
 0x1da   : > { %v2198_v20 = vpop.eup %1808  ;;  %v1175_v21 = vrot.slane %v1174_v17, 2  ;;  %v1167_v22 = vadd.f32 %v1166_v18, %v1165_v11  ;;  %v1187_v23 = vrot.slane %v1186_v19, 4  ;;  %v903_v18 = vadd.f32 %v1720_v24, %v2162_v43 }
 0x1db   : > { %v1179_v25 = vsel %vm325_vm1, %v2198_v20, 0.0  ;;  %v913_v43 = vadd.f32 %v1723_v59, %v2166_v45 }
 0x1dc   : > { %v1176_v26 = vadd.f32 %v1175_v21, %v1174_v17  ;;  %v1168_v27 = vrot.slane %v1167_v22, 2  ;;  %v1188_v28 = vadd.f32 %v1187_v23, %v1186_v19  ;;  %v1180_v29 = vrot.slane %v1179_v25, 4  ;;  %v1726_v19 = vpop.f32.mrf.mxu1  ;;  %v1550_v23 = vld [vmem:[%s2295_s4 + $0x2] ss:$0 sm:$0xff] }
 0x1dd   : > { %v2202_v30 = vpop.eup %1810 }
 0x1de   : > { %v1177_v31 = vrot.slane %v1176_v26, 1  ;;  %v1169_v32 = vadd.f32 %v1168_v27, %v1167_v22  ;;  %v1189_v33 = vrot.slane %v1188_v28, 2  ;;  %v1181_v34 = vadd.f32 %v1180_v29, %v1179_v25 }
 0x1df   : > { %v2204_v35 = vpop.eup %1812  ;;  %v1200_v37 = vsel %vm325_vm1, %v2202_v30, 0.0  ;;  %v898_v27 = vadd.f32 %v897_v36, %v2164_v44 }
 0x1e0   : > { %v1178_v38 = vadd.f32 %v1177_v31, %v1176_v26  ;;  %v1170_v39 = vrot.slane %v1169_v32, 1  ;;  %v1190_v40 = vadd.f32 %v1189_v33, %v1188_v28  ;;  %v1182_v41 = vrot.slane %v1181_v34, 2 }
 0x1e1   : > { %v2208_v42 = vpop.eup %1814  ;;  %v1201_v51 = vrot.slane %v1200_v37, 4  ;;  %v1193_v52 = vsel %vm325_vm1, %v2204_v35, 0.0  ;;  %v941_v33 = vadd.f32 %v1550_v23, %v903_v18 }
 0x1e2   : > { %1818 = vrcp.f32 %v1178_v38  ;;  %v1171_v53 = vadd.f32 %v1170_v39, %v1169_v32  ;;  %v1191_v55 = vrot.slane %v1190_v40, 1  ;;  %v1183_v56 = vadd.f32 %v1182_v41, %v1181_v34  ;;  %v917_v34 = vpop.f32.mrf.mxu1 }
 0x1e3   : > { %v2212_v57 = vpop.eup %1816  ;;  %v1202_v54 = vadd.f32 %v1201_v51, %v1200_v37  ;;  %v1194_v60 = vrot.slane %v1193_v52, 4  ;;  %v1214_v61 = vsel %vm325_vm1, %v2208_v42, 0.0  ;;  %v940_v39 = vadd.f32 %v1550_v23, %v898_v27 }
 0x1e4   : > { %1820 = vrcp.f32 %v1171_v53  ;;  %v1192_v62 = vadd.f32 %v1191_v55, %v1190_v40  ;;  %v1184_v0 = vrot.slane %v1183_v56, 1  ;;  %v1215_v1 = vrot.slane %v1214_v61, 4  ;;  %v1729_v51 = vpop.f32.mrf.mxu1 }
 0x1e5   : > { %v1203_v2 = vrot.slane %v1202_v54, 2  ;;  %v1195_v58 = vadd.f32 %v1194_v60, %v1193_v52  ;;  %v1207_v3 = vsel %vm325_vm1, %v2212_v57, 0.0  ;;  %v908_v40 = vadd.f32 %v907_v8, %v2168_v46 }
 0x1e6   : > { %1822 = vrcp.f32 %v1192_v62  ;;  %v1185_v4 = vadd.f32 %v1184_v0, %v1183_v56  ;;  %v1216_v6 = vadd.f32 %v1215_v1, %v1214_v61  ;;  %v1208_v7 = vrot.slane %v1207_v3, 4 }
 0x1e7   : > { %v1204_v9 = vadd.f32 %v1203_v2, %v1202_v54  ;;  %v1196_v63 = vrot.slane %v1195_v58, 2  ;;  %v943_v52 = vadd.f32 %v1550_v23, %v913_v43  ;;  %v942_v59 = vadd.f32 %v1550_v23, %v908_v40 }
 0x1e8   : > { %1824 = vrcp.f32 %v1185_v4  ;;  %v1217_v10 = vrot.slane %v1216_v6, 2  ;;  %v1209_v13 = vadd.f32 %v1208_v7, %v1207_v3  ;;  %v923_v61 = vadd.f32 %v1726_v19, %v2170_v47 }
 0x1e9   : > { %v1205_v5 = vrot.slane %v1204_v9, 1  ;;  %v1197_v15 = vadd.f32 %v1196_v63, %v1195_v58  ;;  %v918_v1 = vadd.f32 %v917_v34, %v2172_v48  ;;  %v933_v2 = vadd.f32 %v1729_v51, %v2174_v49 }
 0x1ea   : > { %v1218_v11 = vadd.f32 %v1217_v10, %v1216_v6  ;;  %v1210_v17 = vrot.slane %v1209_v13, 2 }
 0x1eb   : > { %v1206_v21 = vadd.f32 %v1205_v5, %v1204_v9  ;;  %v1198_v22 = vrot.slane %v1197_v15, 1  ;;  %v945_v5 = vadd.f32 %v1550_v23, %v923_v61  ;;  %v944_v48 = vadd.f32 %v1550_v23, %v918_v1 }
 0x1ec   : > { %v1219_v25 = vrot.slane %v1218_v11, 1  ;;  %v1211_v26 = vadd.f32 %v1210_v17, %v1209_v13 }
 0x1ed   : > { %1826 = vrcp.f32 %v1206_v21  ;;  %v1199_v28 = vadd.f32 %v1198_v22, %v1197_v15  ;;  %v947_v15 = vadd.f32 %v1550_v23, %v933_v2 }
 0x1ee   : > { %v1220_v29 = vadd.f32 %v1219_v25, %v1218_v11  ;;  %v1212_v31 = vrot.slane %v1211_v26, 1 }
 0x1ef   : > { %v1819_v32 = vpop.eup %1818  ;;  %1828 = vrcp.f32 %v1199_v28 }
 0x1f0   : > { %v1230_v24 = vmul.f32 %v1819_v32, %v2186_v12  ;;  %1830 = vrcp.f32 %v1220_v29  ;;  %v1213_v37 = vadd.f32 %v1212_v31, %v1211_v26 }
 0x1f1   : > { %v1821_v38 = vpop.eup %1820 }
 0x1f2   : > { %v1238_v41 = vmul.f32 %v1230_v24, %v941_v33  ;;  %v1229_v44 = vmul.f32 %v1821_v38, %v2190_v14  ;;  %1832 = vrcp.f32 %v1213_v37  ;;  %v927_v14 = vpop.f32.mrf.mxu1 }
 0x1f3   : > { %v1823_v36 = vpop.eup %1822  ;;  %v928_v8 = vadd.f32 %v927_v14, %v2176_v50 }
 0x1f4   : > { %v1252_v53 = vsel %vm325_vm1, %v1238_v41, 0.0  ;;  %v1237_v55 = vmul.f32 %v1229_v44, %v940_v39  ;;  %v1232_v45 = vmul.f32 %v1823_v36, %v2194_v16 }
 0x1f5   : > { %v1825_v56 = vpop.eup %1824  ;;  %v1253_v12 = vrot.slane %v1252_v53, 4  ;;  %v946_v22 = vadd.f32 %v1550_v23, %v928_v8 }
 0x1f6   : > { %v1245_v54 = vsel %vm325_vm1, %v1237_v55, 0.0  ;;  %v1240_v60 = vmul.f32 %v1232_v45, %v943_v52  ;;  %v1231_v46 = vmul.f32 %v1825_v56, %v2198_v20 }
 0x1f7   : > { %v1254_v62 = vadd.f32 %v1253_v12, %v1252_v53  ;;  %v1246_v0 = vrot.slane %v1245_v54, 4 }
 0x1f8   : > { %v1266_v58 = vsel %vm325_vm1, %v1240_v60, 0.0  ;;  %v1239_v16 = vmul.f32 %v1231_v46, %v942_v59 }
 0x1f9   : > { %v1255_v3 = vrot.slane %v1254_v62, 2  ;;  %v1247_v4 = vadd.f32 %v1246_v0, %v1245_v54  ;;  %v1267_v6 = vrot.slane %v1266_v58, 4 }
 0x1fa   : > { %v1827_v7 = vpop.eup %1826  ;;  %v1259_v20 = vsel %vm325_vm1, %v1239_v16, 0.0 }
 0x1fb   : > { %v1256_v9 = vadd.f32 %v1255_v3, %v1254_v62  ;;  %v1248_v47 = vrot.slane %v1247_v4, 2  ;;  %v1268_v63 = vadd.f32 %v1267_v6, %v1266_v58  ;;  %v1260_v10 = vrot.slane %v1259_v20, 4 }
 0x1fc   : > { %v1829_v13 = vpop.eup %1828  ;;  %v1234_v49 = vmul.f32 %v1827_v7, %v2202_v30 }
 0x1fd   : > { %v1831_v11 = vpop.eup %1830  ;;  %v1257_v17 = vrot.slane %v1256_v9, 1  ;;  %v1249_v18 = vadd.f32 %v1248_v47, %v1247_v4  ;;  %v1269_v19 = vrot.slane %v1268_v63, 2  ;;  %v1261_v21 = vadd.f32 %v1260_v10, %v1259_v20 }
 0x1fe   : > { %v1242_v25 = vmul.f32 %v1234_v49, %v945_v5  ;;  %v1233_v50 = vmul.f32 %v1829_v13, %v2204_v35  ;;  %v1236_v26 = vmul.f32 %v1831_v11, %v2208_v42  ;;  %v1559_v13 = vld [vmem:[%s2295_s4 + $0x3] ss:$0 sm:$0xff] }
 0x1ff   : > { %v1833_v27 = vpop.eup %1832  ;;  %v1250_v28 = vrot.slane %v1249_v18, 1  ;;  %v1270_v29 = vadd.f32 %v1269_v19, %v1268_v63  ;;  %v1262_v31 = vrot.slane %v1261_v21, 2  ;;  %v1258_v43 = vadd.f32 %v1257_v17, %v1256_v9 }
 0x200   : > { %v1280_v32 = vsel %vm325_vm1, %v1242_v25, 0.0  ;;  %v1241_v33 = vmul.f32 %v1233_v50, %v944_v48  ;;  %v1244_v30 = vmul.f32 %v1236_v26, %v947_v15  ;;  %v1235_v34 = vmul.f32 %v1833_v27, %v2212_v57 }
 0x201   : > { %v1251_v24 = vadd.f32 %v1250_v28, %v1249_v18  ;;  %v1263_v37 = vadd.f32 %v1262_v31, %v1261_v21  ;;  %v1281_v23 = vrot.slane %v1280_v32, 4  ;;  %v1271_v39 = vrot.slane %v1270_v29, 1 }
 0x202   : > { %v1273_v38 = vsel %vm325_vm1, %v1241_v33, 0.0  ;;  %v1243_v35 = vmul.f32 %v1235_v34, %v946_v22  ;;  %v1294_v42 = vsel %vm325_vm1, %v1244_v30, 0.0 }
 0x203   : > { %v1264_v40 = vrot.slane %v1263_v37, 1  ;;  %v1274_v41 = vrot.slane %v1273_v38, 4  ;;  %v1282_v44 = vadd.f32 %v1281_v23, %v1280_v32  ;;  %v1295_v51 = vrot.slane %v1294_v42, 4 }
 0x204   : > { %v1287_v36 = vsel %vm325_vm1, %v1243_v35, 0.0  ;;  %v1314_v52 = vsel %vm1313_vm3, %v1258_v43, %v1251_v24  ;;  %v1272_v56 = vadd.f32 %v1271_v39, %v1270_v29 }
 0x205   : > { %v1275_v57 = vadd.f32 %v1274_v41, %v1273_v38  ;;  %v1288_v53 = vrot.slane %v1287_v36, 4  ;;  %v1265_v55 = vadd.f32 %v1264_v40, %v1263_v37  ;;  %v1283_v45 = vrot.slane %v1282_v44, 2 }
 0x206   : > { %v1296_v12 = vadd.f32 %v1295_v51, %v1294_v42 }
 0x207   : > { %v1276_v59 = vrot.slane %v1275_v57, 2  ;;  %v1284_v54 = vadd.f32 %v1283_v45, %v1282_v44  ;;  %v1289_v60 = vadd.f32 %v1288_v53, %v1287_v36  ;;  %v1316_v46 = vsel %vm1315_vm4, %v1265_v55, %v1314_v52 }
 0x208   : > { %v1297_v61 = vrot.slane %v1296_v12, 2  ;;  %v1318_v14 = vsel %vm1317_vm5, %v1272_v56, %v1316_v46 }
 0x209   : > { %v1277_v62 = vadd.f32 %v1276_v59, %v1275_v57  ;;  %v1290_v0 = vrot.slane %v1289_v60, 2  ;;  %v1285_v1 = vrot.slane %v1284_v54, 1 }
 0x20a   : > { %v1298_v2 = vadd.f32 %v1297_v61, %v1296_v12 }
 0x20b   : > { %v1278_v58 = vrot.slane %v1277_v62, 1  ;;  %v1291_v16 = vadd.f32 %v1290_v0, %v1289_v60  ;;  %v1286_v7 = vadd.f32 %v1285_v1, %v1284_v54 }
 0x20c   : > { %v1299_v3 = vrot.slane %v1298_v2, 1 }
 0x20d   : > { %v1279_v4 = vadd.f32 %v1278_v58, %v1277_v62  ;;  %v1292_v6 = vrot.slane %v1291_v16, 1 }
 0x20e   : > { %v1300_v9 = vadd.f32 %v1299_v3, %v1298_v2 }
 0x20f   : > { %v1293_v8 = vadd.f32 %v1292_v6, %v1291_v16  ;;  %v1320_v20 = vsel %vm1319_vm6, %v1279_v4, %v1318_v14 }
 0x210   : > { %v1322_v47 = vsel %vm1321_vm7, %v1286_v7, %v1320_v20 }
 0x211   : > { %v1324_v63 = vsel %vm1323_vm8, %v1293_v8, %v1322_v47 }
 0x212   : > { %v1326_v10 = vsel %vm1325_vm9, %v1300_v9, %v1324_v63 }
 0x213   : > { %1759 = vmatmul.mubr.msk.f32.vlgmr.msra.gmra.mxu1 %vm325_vm1, %v1326_v10 }
 0x2d3   : > { %v1395_v5 = vpop.f32.mrf.mxu1 }
 0x2d4   : > { %v1396_v48 = vadd.f32 %v1559_v13, %v1395_v5 }
 0x2d5   : > { %v1760_v15 = vpop.f32.mrf.mxu1 }
 0x2d6   : > { %1399 = vst.msk [vmem:[%s250_s11] sm:$0xff] %vm325_vm1, %v1396_v48 }
 0x2d7   : > { %1847 = shalt.err (!%p1844_p3)
}
 0x2d8   : > { %s1848_s30 = scalar_lea.hbm %s2255_s15, 128  ;;  %s1852_s7 = scalar_lea.hbm %s2296_s5, 256 }
 0x2d9   : > { %p1849_p4 = scmp.ne.s32.totalorder %s2255_s15, %s1848_s30  ;;  %p1853_p9 = scmp.lt.s32.totalorder %s2255_s15, %s2296_s5 }
 0x2da   : > { %p1854_p10 = scmp.lt.s32.totalorder %s1852_s7, %s1848_s30 }
 0x2db   : > { %p1850_p7 = pnand %p1849_p4, %p1967_p5 }
 0x2dc   : > { %p1855_p11 = por %p1854_p10, %p1853_p9 }
 0x2dd   : > { %p1851_p8 = pneg %p1850_p7 }
 0x2df   : > { %p1856_p12 = pnand %p1855_p11, %p1851_p8 }
 0x2e1   : > { %1859 = shalt.err (!%p1856_p12)
}
 0x2e2   : > { %1761 = dma.vmem_to_hbm [thread:$0]  (%p1967_p5), %s1415_s12, 128, %s2255_s15, %s1401_s16  }
 0x2e3 PF: > { %p1767_p13 = scmp.ge.s32.totalorder %s1894_s21, 2  ;;  %s1426_s10 = sand.u32 1, %s1882_s18  }
 0x2e4   : > { %s1427_s11 = scalar_lea.sflag [#allocation3], %s1426_s10 }
 0x2e5   : > { %p1764_p0 = pnand %p1767_p13, %p1971_p6 }
 0x2e7   : > { %p1765_p1 = pneg %p1764_p0 }
 0x2e9   : > { %1877 = dma.done.wait (%p1765_p1), %s1427_s11, 128  }
 0x2ea   : > { %1879 = vsyncadd (%p1765_p1), %s1427_s11, 4294967168  ;;  %p15_p2 = scmp.ge.s32.totalorder %s1954_s24, 4   ;;  %s2299_s18 = smov %s1886_s19 }
 0x2eb   : > { %s2300_s19 = smov %s1890_s20  ;;  %s2301_s20 = smov %s1965_s27 }
 0x2ec   : > { %s2302_s21 = smov %s1954_s24  ;;  %17 = sbr.rel (!%p15_p2) target bundleno = 3 (0x3), region = 81 }
 0x2f1   :  { %1432 = vsyncpa [#allocation3], 1 }
 0x2f2   :  { %1434 = vsyncpa [#allocation3 + $0x1], 1 }

</bundles_post_ra>
